<compile_context>
chip_gen: v7x
topology: tpu7x:2x2x1
jax: 0.10.0
libtpu: 0.0.40
codegen_flags: <defaults>
</compile_context>

<pallas_src>
import functools

import jax
import jax.numpy as jnp
import numpy as np
from jax.experimental import pallas as pl
from jax.experimental.pallas import tpu as pltpu


def _prompt_sg_kernel(x_ref, w1_ref, bias_ref, w2_ref, attr_bd_ref, o_ref, *,
                      num_tokens, embed_num, hidden):
    nk = num_tokens * embed_num

    x = x_ref[...]                                    # (bB, D_in); gate already folded into w1
    b1 = bias_ref[0:1, 0:hidden]                      # (1, H)
    b2 = bias_ref[1:2, 0:nk]                          # (1, NK)

    # lin1 + exact GELU (torch nn.GELU default = erf formulation).
    h = jnp.dot(x, w1_ref[...], preferred_element_type=jnp.float32) + b1
    h = 0.5 * h * (1.0 + jax.lax.erf(h * np.float32(1.0 / np.sqrt(2.0))))

    # lin2 -> all softmax logits at once: (bB, NK).
    logits = jnp.dot(h, w2_ref[...], preferred_element_type=jnp.float32) + b2

    # Vectorized per-token softmax over embed_num.
    # A per-row GLOBAL max is numerically safe and mathematically identical:
    # the common factor cancels in each segment's normalization.
    m = jnp.max(logits, axis=-1, keepdims=True)
    e = jnp.exp(logits - m)                           # (bB, NK)

    # Segment-indicator matrices, built in-kernel from iota (constants).
    r = jax.lax.broadcasted_iota(jnp.int32, (nk, num_tokens), 0)
    c = jax.lax.broadcasted_iota(jnp.int32, (nk, num_tokens), 1)
    seg_down = ((r >= c * embed_num) & (r < (c + 1) * embed_num)
                ).astype(jnp.float32)                 # (NK, T)
    rt = jax.lax.broadcasted_iota(jnp.int32, (num_tokens, nk), 1)
    ct = jax.lax.broadcasted_iota(jnp.int32, (num_tokens, nk), 0)
    seg_up = ((rt >= ct * embed_num) & (rt < (ct + 1) * embed_num)
              ).astype(jnp.float32)                   # (T, NK)

    seg_sum = jnp.dot(e, seg_down, preferred_element_type=jnp.float32)   # (bB, T)
    inv = pl.reciprocal(seg_sum, approx=True)                            # EUP slot
    denom = jnp.dot(inv, seg_up, preferred_element_type=jnp.float32)     # (bB, NK)
    p = e * denom                                     # softmax coefficients

    # One block-diagonal matmul -> one lane-dense (bB, T*embed_dim) store.
    o_ref[...] = jnp.dot(p, attr_bd_ref[...],
                         preferred_element_type=jnp.float32).astype(o_ref.dtype)


def prepare_params(raw, *, prompt_len, prompt_layers, embed_num, embed_dim):
    """One-time parameter transform (call once at init, NOT per forward)."""
    num_tokens = prompt_len * prompt_layers
    nk = num_tokens * embed_num

    w1 = raw["w1"].astype(jnp.float32)                       # (D_in, H)
    hidden = w1.shape[1]
    gate = jax.nn.sigmoid(raw["gate_logit"].reshape(-1).astype(jnp.float32))
    w1_gated = w1 * gate[:, None]                            # fold x*sigmoid(gate) into lin1

    pack_w = max(hidden, nk)
    bias_pack = jnp.zeros((2, pack_w), jnp.float32)
    bias_pack = bias_pack.at[0, :hidden].set(raw["b1"].reshape(-1).astype(jnp.float32))
    bias_pack = bias_pack.at[1, :nk].set(raw["b2"].reshape(-1).astype(jnp.float32))

    # Block-diagonal attribute table: (NK, num_tokens*embed_dim).
    attr_bd = jnp.kron(jnp.eye(num_tokens, dtype=jnp.float32),
                       raw["attributes"].astype(jnp.float32))

    return {"w1g": w1_gated, "bias_pack": bias_pack,
            "w2": raw["w2"].astype(jnp.float32), "attr_bd": attr_bd}


def prompt_sg_forward(x, prepared, *, prompt_len, prompt_layers, embed_num,
                      embed_dim, block_b=512):
    B, d_in = x.shape
    num_tokens = prompt_len * prompt_layers
    out_w = num_tokens * embed_dim
    hidden = prepared["w1g"].shape[1]

    bb = B if B <= block_b else block_b          # single grid point at toy sizes
    grid = (pl.cdiv(B, bb),)

    kernel = functools.partial(_prompt_sg_kernel, num_tokens=num_tokens,
                               embed_num=embed_num, hidden=hidden)

    out = pl.pallas_call(
        kernel,
        out_shape=jax.ShapeDtypeStruct((B, out_w), jnp.float32),
        grid_spec=pltpu.PrefetchScalarGridSpec(
            num_scalar_prefetch=0,
            grid=grid,
            in_specs=[
                pl.BlockSpec((bb, d_in), lambda i: (i, 0)),
                pl.BlockSpec(prepared["w1g"].shape, lambda i: (0, 0)),
                pl.BlockSpec(prepared["bias_pack"].shape, lambda i: (0, 0)),
                pl.BlockSpec(prepared["w2"].shape, lambda i: (0, 0)),
                pl.BlockSpec(prepared["attr_bd"].shape, lambda i: (0, 0)),
            ],
            out_specs=pl.BlockSpec((bb, out_w), lambda i: (i, 0)),
        ),
        compiler_params=pltpu.CompilerParams(
            dimension_semantics=("parallel",)),
    )(x, prepared["w1g"], prepared["bias_pack"], prepared["w2"],
      prepared["attr_bd"])

    if prompt_layers > 1:
        return out.reshape(B, prompt_layers, prompt_len, embed_dim)
    return out.reshape(B, num_tokens, embed_dim)


def _reference(x, raw, *, prompt_len, prompt_layers, embed_num, embed_dim):
    B = x.shape[0]
    xg = x * jax.nn.sigmoid(raw["gate_logit"])
    h = jax.nn.gelu(xg @ raw["w1"] + raw["b1"], approximate=False)
    logits = h @ raw["w2"] + raw["b2"]
    coef = jax.nn.softmax(
        logits.reshape(B, prompt_len * prompt_layers, embed_num), axis=-1)
    prompts = jnp.einsum("bom,mv->bov", coef, raw["attributes"])
    if prompt_layers > 1:
        return prompts.reshape(B, prompt_layers, prompt_len, embed_dim)
    return prompts


if __name__ == "__main__":
    # Small config consistent with the module's __init__.
    embed_num = 8
    embed_dim = 32
    proj_input_dim = 32
    proj_hidd_dim = 32
    promptL = 4
    promptLayers = 3
    B = 2

    key = jax.random.PRNGKey(0)
    k_attr, k_w1, k_b1, k_w2, k_b2, k_x = jax.random.split(key, 6)

    lin2_out = promptL * promptLayers * embed_num

    raw_params = {
        # torch.nn.init.normal_(std=0.02)
        "attributes": 0.02 * jax.random.normal(k_attr, (embed_num, embed_dim),
                                               dtype=jnp.float32),
        # -ones(proj_input_dim) * 0.5 ; kept 2-D for lane layout
        "gate_logit": -0.5 * jnp.ones((1, proj_input_dim), dtype=jnp.float32),
        # linear layers stored as (in, out); biases as (1, out)
        "w1": 0.1 * jax.random.normal(k_w1, (proj_input_dim, proj_hidd_dim),
                                      dtype=jnp.float32),
        "b1": 0.1 * jax.random.normal(k_b1, (1, proj_hidd_dim), dtype=jnp.float32),
        "w2": 0.1 * jax.random.normal(k_w2, (proj_hidd_dim, lin2_out),
                                      dtype=jnp.float32),
        "b2": 0.1 * jax.random.normal(k_b2, (1, lin2_out), dtype=jnp.float32),
    }

    # One-time parameter prep (gate fold, bias pack, block-diagonal attrs).
    prepared = prepare_params(raw_params, prompt_len=promptL,
                              prompt_layers=promptLayers,
                              embed_num=embed_num, embed_dim=embed_dim)

    x = jax.random.normal(k_x, (B, proj_input_dim), dtype=jnp.float32)

    out = prompt_sg_forward(x, prepared,
                            prompt_len=promptL, prompt_layers=promptLayers,
                            embed_num=embed_num, embed_dim=embed_dim)
    out = jax.block_until_ready(out)

    ref = _reference(x, raw_params,
                     prompt_len=promptL, prompt_layers=promptLayers,
                     embed_num=embed_num, embed_dim=embed_dim)

    assert out.shape == (B, promptLayers, promptL, embed_dim), out.shape
    # Tolerance loosened slightly vs v1 because the softmax denominator now
    # uses the EUP approximate reciprocal (per perf review).
    np.testing.assert_allclose(np.asarray(out), np.asarray(ref),
                               rtol=1e-2, atol=1e-5)
    print("KERNEL_OK")
</pallas_src>

<mosaic_0001>
module attributes {stable_mosaic.version = 11 : i64} {
  func.func @_prompt_sg_kernel(%arg0: i32, %arg1: memref<2x32xf32, #tpu.memory_space<vmem>>, %arg2: memref<32x32xf32, #tpu.memory_space<vmem>>, %arg3: memref<2x96xf32, #tpu.memory_space<vmem>>, %arg4: memref<32x96xf32, #tpu.memory_space<vmem>>, %arg5: memref<96x384xf32, #tpu.memory_space<vmem>>, %arg6: memref<2x384xf32, #tpu.memory_space<vmem>>) attributes {dimension_semantics = [#tpu.dimension_semantics<parallel>], iteration_bounds = array<i64: 1>, scalar_prefetch = 0 : i64, scratch_operands = 0 : i64, tpu.core_type = #tpu.core_type<tc>, window_params = [{transform_indices = @transform_0, window_bounds = array<i64: 2, 32>}, {pipeline_mode = #tpu.pipeline_mode<synchronous>, transform_indices = @transform_1, window_bounds = array<i64: 32, 32>}, {pipeline_mode = #tpu.pipeline_mode<synchronous>, transform_indices = @transform_2, window_bounds = array<i64: 2, 96>}, {pipeline_mode = #tpu.pipeline_mode<synchronous>, transform_indices = @transform_3, window_bounds = array<i64: 32, 96>}, {pipeline_mode = #tpu.pipeline_mode<synchronous>, transform_indices = @transform_4, window_bounds = array<i64: 96, 384>}, {transform_indices = @transform_5, window_bounds = array<i64: 2, 384>}]} {
    %c0 = arith.constant 0 : index
    %c0_0 = arith.constant 0 : index
    %0 = vector.load %arg1[%c0, %c0_0] : memref<2x32xf32, #tpu.memory_space<vmem>>, vector<2x32xf32>
    %c0_1 = arith.constant 0 : index
    %c0_2 = arith.constant 0 : index
    %1 = vector.load %arg3[%c0_1, %c0_2] : memref<2x96xf32, #tpu.memory_space<vmem>>, vector<1x32xf32>
    %c1 = arith.constant 1 : index
    %c0_3 = arith.constant 0 : index
    %2 = vector.load %arg3[%c1, %c0_3] : memref<2x96xf32, #tpu.memory_space<vmem>>, vector<1x96xf32>
    %c0_4 = arith.constant 0 : index
    %c0_5 = arith.constant 0 : index
    %3 = vector.load %arg2[%c0_4, %c0_5] : memref<32x32xf32, #tpu.memory_space<vmem>>, vector<32x32xf32>
    %cst = arith.constant dense<0.000000e+00> : vector<2x32xf32>
    %4 = tpu.matmul %0, %3, %cst {dimension_numbers = #tpu.dot_dimension_numbers<[1], [0], [0], [1], [0, 0, 1, 1], [], []>} : vector<2x32xf32>, vector<32x32xf32>, vector<2x32xf32> -> vector<2x32xf32>
    %5 = vector.broadcast %1 : vector<1x32xf32> to vector<2x32xf32>
    %6 = arith.addf %4, %5 : vector<2x32xf32>
    %cst_6 = arith.constant 5.000000e-01 : f32
    %7 = vector.broadcast %cst_6 : f32 to vector<2x32xf32>
    %8 = arith.mulf %7, %6 : vector<2x32xf32>
    %cst_7 = arith.constant 0.707106769 : f32
    %9 = vector.broadcast %cst_7 : f32 to vector<2x32xf32>
    %10 = arith.mulf %6, %9 : vector<2x32xf32>
    %11 = math.erf %10 : vector<2x32xf32>
    %cst_8 = arith.constant 1.000000e+00 : f32
    %12 = vector.broadcast %cst_8 : f32 to vector<2x32xf32>
    %13 = arith.addf %12, %11 : vector<2x32xf32>
    %14 = arith.mulf %8, %13 : vector<2x32xf32>
    %c0_9 = arith.constant 0 : index
    %c0_10 = arith.constant 0 : index
    %15 = vector.load %arg4[%c0_9, %c0_10] : memref<32x96xf32, #tpu.memory_space<vmem>>, vector<32x96xf32>
    %cst_11 = arith.constant dense<0.000000e+00> : vector<2x96xf32>
    %16 = tpu.matmul %14, %15, %cst_11 {dimension_numbers = #tpu.dot_dimension_numbers<[1], [0], [0], [1], [0, 0, 1, 1], [], []>} : vector<2x32xf32>, vector<32x96xf32>, vector<2x96xf32> -> vector<2x96xf32>
    %17 = vector.broadcast %2 : vector<1x96xf32> to vector<2x96xf32>
    %18 = arith.addf %16, %17 : vector<2x96xf32>
    %cst_12 = arith.constant dense<0xFF800000> : vector<2xf32>
    %19 = vector.multi_reduction <maximumf>, %18, %cst_12 [1] : vector<2x96xf32> to vector<2xf32>
    %20 = vector.shape_cast %19 : vector<2xf32> to vector<2x1xf32>
    %21 = vector.broadcast %20 : vector<2x1xf32> to vector<2x96xf32>
    %22 = arith.subf %18, %21 : vector<2x96xf32>
    %23 = math.exp %22 : vector<2x96xf32>
    %24 = tpu.iota {dimensions = array<i32: 0>} : vector<96x12xi32>
    %25 = tpu.iota {dimensions = array<i32: 1>} : vector<96x12xi32>
    %c8_i32 = arith.constant 8 : i32
    %26 = vector.broadcast %c8_i32 : i32 to vector<96x12xi32>
    %27 = arith.muli %25, %26 : vector<96x12xi32>
    %28 = arith.cmpi sge, %24, %27 : vector<96x12xi32>
    %c1_i32 = arith.constant 1 : i32
    %29 = vector.broadcast %c1_i32 : i32 to vector<96x12xi32>
    %30 = arith.addi %25, %29 : vector<96x12xi32>
    %c8_i32_13 = arith.constant 8 : i32
    %31 = vector.broadcast %c8_i32_13 : i32 to vector<96x12xi32>
    %32 = arith.muli %30, %31 : vector<96x12xi32>
    %33 = arith.cmpi slt, %24, %32 : vector<96x12xi32>
    %34 = arith.andi %28, %33 : vector<96x12xi1>
    %35 = arith.extui %34 : vector<96x12xi1> to vector<96x12xi32>
    %36 = arith.sitofp %35 : vector<96x12xi32> to vector<96x12xf32>
    %37 = tpu.iota {dimensions = array<i32: 1>} : vector<12x96xi32>
    %38 = tpu.iota {dimensions = array<i32: 0>} : vector<12x96xi32>
    %c8_i32_14 = arith.constant 8 : i32
    %39 = vector.broadcast %c8_i32_14 : i32 to vector<12x96xi32>
    %40 = arith.muli %38, %39 : vector<12x96xi32>
    %41 = arith.cmpi sge, %37, %40 : vector<12x96xi32>
    %c1_i32_15 = arith.constant 1 : i32
    %42 = vector.broadcast %c1_i32_15 : i32 to vector<12x96xi32>
    %43 = arith.addi %38, %42 : vector<12x96xi32>
    %c8_i32_16 = arith.constant 8 : i32
    %44 = vector.broadcast %c8_i32_16 : i32 to vector<12x96xi32>
    %45 = arith.muli %43, %44 : vector<12x96xi32>
    %46 = arith.cmpi slt, %37, %45 : vector<12x96xi32>
    %47 = arith.andi %41, %46 : vector<12x96xi1>
    %48 = arith.extui %47 : vector<12x96xi1> to vector<12x96xi32>
    %49 = arith.sitofp %48 : vector<12x96xi32> to vector<12x96xf32>
    %cst_17 = arith.constant dense<0.000000e+00> : vector<2x12xf32>
    %50 = tpu.matmul %23, %36, %cst_17 {dimension_numbers = #tpu.dot_dimension_numbers<[1], [0], [0], [1], [0, 0, 1, 1], [], []>} : vector<2x96xf32>, vector<96x12xf32>, vector<2x12xf32> -> vector<2x12xf32>
    %51 = tpu.reciprocal %50 {approx = true} : vector<2x12xf32> -> vector<2x12xf32>
    %cst_18 = arith.constant dense<0.000000e+00> : vector<2x96xf32>
    %52 = tpu.matmul %51, %49, %cst_18 {dimension_numbers = #tpu.dot_dimension_numbers<[1], [0], [0], [1], [0, 0, 1, 1], [], []>} : vector<2x12xf32>, vector<12x96xf32>, vector<2x96xf32> -> vector<2x96xf32>
    %53 = arith.mulf %23, %52 : vector<2x96xf32>
    %c0_19 = arith.constant 0 : index
    %c0_20 = arith.constant 0 : index
    %54 = vector.load %arg5[%c0_19, %c0_20] : memref<96x384xf32, #tpu.memory_space<vmem>>, vector<96x384xf32>
    %cst_21 = arith.constant dense<0.000000e+00> : vector<2x384xf32>
    %55 = tpu.matmul %53, %54, %cst_21 {dimension_numbers = #tpu.dot_dimension_numbers<[1], [0], [0], [1], [0, 0, 1, 1], [], []>} : vector<2x96xf32>, vector<96x384xf32>, vector<2x384xf32> -> vector<2x384xf32>
    %c0_22 = arith.constant 0 : index
    %c0_23 = arith.constant 0 : index
    %56 = vector.load %arg6[%c0_22, %c0_23] : memref<2x384xf32, #tpu.memory_space<vmem>>, vector<2x384xf32>
    tpu.vector_store %arg6[%c0_22, %c0_23], %55 {strides = array<i32>} : memref<2x384xf32, #tpu.memory_space<vmem>>, vector<2x384xf32>,
    return
  }
  func.func @transform_0(%arg0: i32) -> (i32, i32) {
    %c0_i32 = arith.constant 0 : i32
    %c0_i32_0 = arith.constant 0 : i32
    return %arg0, %c0_i32 : i32, i32
  }
  func.func @transform_1(%arg0: i32) -> (i32, i32) {
    %c0_i32 = arith.constant 0 : i32
    %c0_i32_0 = arith.constant 0 : i32
    %c0_i32_1 = arith.constant 0 : i32
    return %c0_i32, %c0_i32_0 : i32, i32
  }
  func.func @transform_2(%arg0: i32) -> (i32, i32) {
    %c0_i32 = arith.constant 0 : i32
    %c0_i32_0 = arith.constant 0 : i32
    %c0_i32_1 = arith.constant 0 : i32
    return %c0_i32, %c0_i32_0 : i32, i32
  }
  func.func @transform_3(%arg0: i32) -> (i32, i32) {
    %c0_i32 = arith.constant 0 : i32
    %c0_i32_0 = arith.constant 0 : i32
    %c0_i32_1 = arith.constant 0 : i32
    return %c0_i32, %c0_i32_0 : i32, i32
  }
  func.func @transform_4(%arg0: i32) -> (i32, i32) {
    %c0_i32 = arith.constant 0 : i32
    %c0_i32_0 = arith.constant 0 : i32
    %c0_i32_1 = arith.constant 0 : i32
    return %c0_i32, %c0_i32_0 : i32, i32
  }
  func.func @transform_5(%arg0: i32) -> (i32, i32) {
    %c0_i32 = arith.constant 0 : i32
    %c0_i32_0 = arith.constant 0 : i32
    return %arg0, %c0_i32 : i32, i32
  }
}

</mosaic_0001>

<bundles_post_ra>
// kernel: tpu_custom_call.1
= control target key start
LH: loop header
LB: loop body
LE: loop exit
PB: predicated region body
PF: predicated region fallthrough
CT: control target
= control target key end

     0   :  { %10 = vsyncpa [#allocation3], 0  ;;  %s1306_s0 = inlined_call_operand.hbm [shape: f32[2,32], index: 0, kind: input, shape index: {}]   ;;  %s1307_s1 = inlined_call_operand.hbm [shape: f32[32,32], index: 1, kind: input, shape index: {}]   ;;  %s1308_s2 = inlined_call_operand.vmem [shape: f32[2,96], index: 2, kind: input, shape index: {}]   ;;  %s1309_s3 = inlined_call_operand.hbm [shape: f32[32,96], index: 3, kind: input, shape index: {}]   ;;  %s1310_s4 = inlined_call_operand.hbm [shape: f32[96,384], index: 4, kind: input, shape index: {}]   ;;  %s1311_s5 = inlined_call_operand.hbm [shape: f32[2,384], index: 5, kind: output, shape index: {}]  }
   0x1   :  { %11 = vsyncpa [#allocation6], 0 }
   0x2   :  { %12 = vsyncpa [#allocation9], 0 }
   0x3   :  { %13 = vsyncpa [#allocation4], 0  ;;  %s1091_s18 = smov [#allocation5]   ;;  %s973_s22 = scalar_lea.hbm %s1307_s1, 512 }
   0x4   :  { %s29_s19 = sshll.u32 %s1091_s18, 4  ;;  %p974_p0 = scmp.ne.s32.totalorder %s1307_s1, %s973_s22  ;;  %s30_s19 = int_to_ptr.vmem [resolvable:$true] %s29_s19 }
   0x5   :  { %p977_p1 = scmp.lt.u32.totalorder %s973_s22, %s1307_s1 }
   0x7   :  { %p979_p2 = pnand %p977_p1, %p974_p0 }
   0x9   :  { %982 = shalt.err (!%p979_p2)
}
   0xa   :  { %s983_s27 = scalar_lea.vmem %s30_s19, 512  ;;  %p988_p4 = scmp.lt.s32.totalorder %s30_s19, %s30_s19 }
   0xb   :  { %p984_p3 = scmp.ne.s32.totalorder %s30_s19, %s983_s27  ;;  %p989_p5 = scmp.lt.s32.totalorder %s983_s27, %s983_s27 }
   0xd   :  { %p990_p6 = por %p989_p5, %p988_p4 }
   0xf   :  { %p991_p7 = pnand %p990_p6, %p984_p3 }
  0x11   :  { %994 = shalt.err (!%p991_p7)
}
  0x12   :  { %s1092_s28 = smov 128   ;;  %s1093_s29 = smov 8  }
  0x13   :  { %35 = dma.hbm_to_vmem [thread:$0]  %s1307_s1, 512, %s30_s19, [#allocation6], %s1092_s28, %s1092_s28, %s1093_s29  }
  0x14   :  { %s1094_s7 = smov [#allocation2]   ;;  %s1095_s9 = smov [#allocation7]  }
  0x15   :  { %s20_s8 = sshll.u32 %s1094_s7, 4  ;;  %s43_s10 = sshll.u32 %s1095_s9, 4  ;;  %s21_s8 = int_to_ptr.vmem [resolvable:$true] %s20_s8  ;;  %s44_s10 = int_to_ptr.vmem [resolvable:$true] %s43_s10 }
  0x16   :  { %s995_s13 = scalar_lea.hbm %s1306_s0, 32 }
  0x17   :  { %p996_p8 = scmp.ne.s32.totalorder %s1306_s0, %s995_s13  ;;  %p999_p9 = scmp.lt.u32.totalorder %s995_s13, %s1306_s0 }
  0x19   :  { %p1001_p10 = pnand %p999_p9, %p996_p8 }
  0x1b   :  { %1004 = shalt.err (!%p1001_p10)
}
  0x1c   :  { %s1005_s1 = scalar_lea.vmem %s21_s8, 32  ;;  %p1010_p12 = scmp.lt.s32.totalorder %s21_s8, %s21_s8 }
  0x1d   :  { %p1006_p11 = scmp.ne.s32.totalorder %s21_s8, %s1005_s1  ;;  %p1011_p13 = scmp.lt.s32.totalorder %s1005_s1, %s1005_s1 }
  0x1f   :  { %p1012_p0 = por %p1011_p13, %p1010_p12 }
  0x21   :  { %p1013_p1 = pnand %p1012_p0, %p1006_p11 }
  0x23   :  { %1016 = shalt.err (!%p1013_p1)
}
  0x24   :  { %23 = dma.hbm_to_vmem [thread:$0]  %s1306_s0, 32, %s21_s8, [#allocation3]  }
  0x25   :  { %s1017_s22 = scalar_lea.hbm %s1309_s3, 512 }
  0x26   :  { %p1018_p2 = scmp.ne.s32.totalorder %s1309_s3, %s1017_s22  ;;  %p1021_p3 = scmp.lt.u32.totalorder %s1017_s22, %s1309_s3 }
  0x28   :  { %p1023_p4 = pnand %p1021_p3, %p1018_p2 }
  0x2a   :  { %1026 = shalt.err (!%p1023_p4)
}
  0x2b   :  { %s1027_s27 = scalar_lea.vmem %s44_s10, 512  ;;  %p1032_p6 = scmp.lt.s32.totalorder %s44_s10, %s44_s10 }
  0x2c   :  { %p1028_p5 = scmp.ne.s32.totalorder %s44_s10, %s1027_s27  ;;  %p1033_p7 = scmp.lt.s32.totalorder %s1027_s27, %s1027_s27 }
  0x2e   :  { %p1034_p8 = por %p1033_p7, %p1032_p6 }
  0x30   :  { %p1035_p9 = pnand %p1034_p8, %p1028_p5 }
  0x32   :  { %1038 = shalt.err (!%p1035_p9)
}
  0x33   :  { %49 = dma.hbm_to_vmem [thread:$0]  %s1309_s3, 512, %s44_s10, [#allocation6], %s1092_s28, %s1092_s28, %s1093_s29  }
  0x34   :  { %s1096_s6 = smov [#allocation8]   ;;  %s1039_s11 = scalar_lea.hbm %s1310_s4, 4608 }
  0x35   :  { %s55_s7 = sshll.u32 %s1096_s6, 4  ;;  %p1040_p10 = scmp.ne.s32.totalorder %s1310_s4, %s1039_s11  ;;  %s56_s7 = int_to_ptr.vmem [resolvable:$true] %s55_s7 }
  0x36   :  { %p1043_p11 = scmp.lt.u32.totalorder %s1039_s11, %s1310_s4 }
  0x38   :  { %p1045_p12 = pnand %p1043_p11, %p1040_p10 }
  0x3a   :  { %1048 = shalt.err (!%p1045_p12)
}
  0x3b   :  { %s1049_s16 = scalar_lea.vmem %s56_s7, 4608  ;;  %p1054_p0 = scmp.lt.s32.totalorder %s56_s7, %s56_s7 }
  0x3c   :  { %p1050_p13 = scmp.ne.s32.totalorder %s56_s7, %s1049_s16  ;;  %p1055_p1 = scmp.lt.s32.totalorder %s1049_s16, %s1049_s16 }
  0x3e   :  { %p1056_p2 = por %p1055_p1, %p1054_p0 }
  0x40   :  { %p1057_p3 = pnand %p1056_p2, %p1050_p13 }
  0x42   :  { %1060 = shalt.err (!%p1057_p3)
}
  0x43   :  { %s1097_s3 = smov 384   ;;  %s1098_s28 = smov 24  }
  0x44   :  { %61 = dma.hbm_to_vmem [thread:$0]  %s1310_s4, 4608, %s56_s7, [#allocation9], %s1097_s3, %s1097_s3, %s1098_s28  }
  0x45   :  { %1083 = dma.done.wait [#allocation3], 32  }
  0x46   :  { %1084 = vsyncadd [#allocation3], 4294967264 }
  0x47   :  { %1085 = dma.done.wait [#allocation6], 1024  }
  0x48   :  { %1086 = vsyncadd [#allocation6], 4294966272 }
  0x49   :  { %1087 = dma.done.wait [#allocation9], 4608  }
  0x4a   :  { %1088 = vsyncadd [#allocation9], 4294962688  ;;  %v1099_v0 = vmov 0.0|0.0   ;;  %vm1100_vm0 = vmmov 0   ;;  %v1101_v1 = vmov 0.0   ;;  %v77_v2 = vld [vmem:[#allocation5] sm:$0xff]  ;;  %v252_v24 = vlaneseq }
  0x4b   :  { %876 = vmatprep.subr.bf16.mxu1 %v1099_v0  ;;  %801 = vmatprep.mubr.msk.f32.mxu1 %vm1100_vm0, %v1101_v1  ;;  %v78_v3 = vld [vmem:[#allocation5 + $0x8] sm:$0xff]  ;;  %v79_v4 = vld [vmem:[#allocation5 + $0x10] sm:$0xff]  ;;  %v80_v6 = vld [vmem:[#allocation5 + $0x18] sm:$0xff]  ;;  %vm85_vm1 = vcmask 261120   ;;  %v1102_v33 = vmov 1.0|1.0  }
  0x4c   :  { %888 = vmatprep.subr.bf16.mxu0 %v1099_v0  ;;  %839 = vmatprep.mubr.msk.f32.mxu0 %vm1100_vm0, %v1101_v1  ;;  %v877_v5 = vpack.c.bf16 %v78_v3, %v77_v2  ;;  %v880_v7 = vpack.c.bf16 %v80_v6, %v79_v4  ;;  %v74_v8 = vld [vmem:[#allocation2] sm:$0x3]  ;;  %v164_v9 = vld [vmem:[#allocation7] sm:$0xff]  ;;  %v165_v10 = vld [vmem:[#allocation7 + $0x8] sm:$0xff]  ;;  %v1209_v25 = vshrl.u32 %v252_v24, 7  ;;  %v1211_v26 = vand.u32 127, %v252_v24 }
  0x4d   :  { %v883_v11 = vpack.c.bf16 %v165_v10, %v164_v9  ;;  %v166_v12 = vld [vmem:[#allocation7 + $0x10] sm:$0xff]  ;;  %v167_v13 = vld [vmem:[#allocation7 + $0x18] sm:$0xff]  ;;  %v1103_v58 = vmov 1.0   ;;  %v501_v60 = vld [vmem:[#allocation8 + $0x8] sm:$0xff] }
  0x4e   :  { %878 = vmatpush3.bf16.msra.mxu1 %v877_v5  ;;  %v886_v14 = vpack.c.bf16 %v167_v13, %v166_v12  ;;  %v718_v15 = vld [vmem:[%s1308_s2] ss:$0 sm:$0xff]  ;;  %v1214_v27 = vadd.s32 8, %v1209_v25  ;;  %v1217_v28 = vmul.u32 8, %v1211_v26  ;;  %v280_v29 = vadd.s32 1, %v1211_v26  ;;  %v504_v61 = vld [vmem:[#allocation8 + $0x20] sm:$0xff] }
  0x4f   :  { %879 = vmatprep.subr.bf16.mxu1 %v1099_v0  ;;  %v255_v30 = vadd.s32 16, %v1209_v25  ;;  %v256_v32 = vadd.s32 24, %v1209_v25  ;;  %v720_v34 = vld [vmem:[%s1308_s2 + $0x1] ss:$0 sm:$0xff]  ;;  %v257_v39 = vadd.s32 32, %v1209_v25  ;;  %v258_v40 = vadd.s32 40, %v1209_v25 }
  0x50   :  { %vm268_vm2 = vcmp.ge.s32.totalorder %v1209_v25, %v1217_v28  ;;  %v1223_v31 = vmul.u32 8, %v280_v29  ;;  %vm269_vm3 = vcmp.ge.s32.totalorder %v1214_v27, %v1217_v28  ;;  %v259_v41 = vadd.s32 48, %v1209_v25  ;;  %v502_v63 = vld [vmem:[#allocation8 + $0x10] sm:$0xff]  ;;  %v505_v2 = vld [vmem:[#allocation8 + $0x28] sm:$0xff]  ;;  %v508_v4 = vld [vmem:[#allocation8 + $0x40] sm:$0xff]  ;;  %s1105_s2 = smov [#allocation10]  }
  0x51   :  { %vm270_vm7 = vcmp.ge.s32.totalorder %v255_v30, %v1217_v28  ;;  %vm271_vm10 = vcmp.ge.s32.totalorder %v256_v32, %v1217_v28  ;;  %v260_v42 = vadd.s32 56, %v1209_v25  ;;  %v261_v43 = vadd.s32 64, %v1209_v25  ;;  %v511_v5 = vld [vmem:[#allocation8 + $0x58] sm:$0xff]  ;;  %v520_v10 = vld [vmem:[#allocation8 + $0xa0] sm:$0xff]  ;;  %v526_v13 = vld [vmem:[#allocation8 + $0xd0] sm:$0xff]  ;;  %s707_s19 = sshll.u32 %s1105_s2, 4  ;;  %s708_s19 = int_to_ptr.vmem [resolvable:$true] %s707_s19 }
  0x52   :  { %881 = vmatpush3.bf16.msra.mxu1 %v880_v7  ;;  %vm282_vm4 = vcmp.lt.s32.totalorder %v1209_v25, %v1223_v31  ;;  %vm283_vm5 = vcmp.lt.s32.totalorder %v1214_v27, %v1223_v31  ;;  %vm284_vm8 = vcmp.lt.s32.totalorder %v255_v30, %v1223_v31  ;;  %vm285_vm11 = vcmp.lt.s32.totalorder %v256_v32, %v1223_v31  ;;  %v514_v7 = vld [vmem:[#allocation8 + $0x70] sm:$0xff]  ;;  %v516_v29 = vld [vmem:[#allocation8 + $0x80] sm:$0xff]  ;;  %v515_v32 = vld [vmem:[#allocation8 + $0x78] sm:$0xff]  ;;  %s1061_s20 = scalar_lea.vmem %s708_s19, 96  ;;  %p1066_p5 = scmp.lt.s32.totalorder %s708_s19, %s708_s19 }
  0x53   :  { %882 = vmatprep.subr.bf16.mxu1 %v1099_v0  ;;  %vm294_vm6 = vmand %vm268_vm2, %vm282_vm4  ;;  %vm272_vm2 = vcmp.ge.s32.totalorder %v257_v39, %v1217_v28  ;;  %vm286_vm4 = vcmp.lt.s32.totalorder %v257_v39, %v1223_v31  ;;  %v262_v44 = vadd.s32 72, %v1209_v25  ;;  %v263_v45 = vadd.s32 80, %v1209_v25  ;;  %v506_v24 = vld [vmem:[#allocation8 + $0x30] sm:$0xff]  ;;  %v525_v39 = vld [vmem:[#allocation8 + $0xc8] sm:$0xff]  ;;  %p1062_p4 = scmp.ne.s32.totalorder %s708_s19, %s1061_s20  ;;  %p1067_p6 = scmp.lt.s32.totalorder %s1061_s20, %s1061_s20 }
  0x54   :  { %vm295_vm9 = vmand %vm269_vm3, %vm283_vm5  ;;  %vm273_vm3 = vcmp.ge.s32.totalorder %v258_v40, %v1217_v28  ;;  %vm287_vm5 = vcmp.lt.s32.totalorder %v258_v40, %v1223_v31  ;;  %v264_v46 = vadd.s32 88, %v1209_v25  ;;  %v335_v51 = vadd.s32 1, %v1214_v27  ;;  %v528_v40 = vld [vmem:[#allocation8 + $0xe0] sm:$0xff] }
  0x55   :  { %802 = vmatmul.mubr.msk.f32.vlgmr.msra.gmra.mrb[0].mxu1 %vm85_vm1, %v74_v8  ;;  %vm889_vm12 = vmpackc.low %vm295_vm9, %vm294_vm6  ;;  %vm274_vm9 = vcmp.ge.s32.totalorder %v259_v41, %v1217_v28  ;;  %v330_v52 = vmul.u32 8, %v1209_v25  ;;  %v331_v53 = vmul.u32 8, %v1214_v27  ;;  %v334_v54 = vadd.s32 1, %v1209_v25  ;;  %v517_v8 = vld [vmem:[#allocation8 + $0x88] sm:$0xff]  ;;  %p1068_p7 = por %p1067_p6, %p1066_p5 }
  0x56   :  { %812 = vmatprep.mubr.msk.f32.mxu1 %vm1100_vm0, %v1101_v1  ;;  %884 = vmatpush3.bf16.msra.mxu1 %v883_v11  ;;  %vm296_vm13 = vmand %vm270_vm7, %vm284_vm8  ;;  %v337_v55 = vmul.u32 8, %v335_v51  ;;  %v910_v62 = vpack.c.bf16 %v504_v61, %v501_v60  ;;  %v935_v3 = vpack.c.bf16 %v505_v2, %v502_v63  ;;  %v938_v6 = vpack.c.bf16 %v511_v5, %v508_v4  ;;  %v523_v11 = vld [vmem:[#allocation8 + $0xb8] sm:$0xff]  ;;  %v532_v51 = vld [vmem:[#allocation8 + $0x100] sm:$0xff] }
  0x57   :  { %885 = vmatprep.subr.bf16.mxu1 %v1099_v0  ;;  %890 = vmatpush3.bf16.msk.msra.mxu0 %vm889_vm12, %v1102_v33  ;;  %vm297_vm14 = vmand %vm271_vm10, %vm285_vm11  ;;  %vm275_vm10 = vcmp.ge.s32.totalorder %v260_v42, %v1217_v28  ;;  %vm288_vm11 = vcmp.lt.s32.totalorder %v259_v41, %v1223_v31  ;;  %vm289_vm12 = vcmp.lt.s32.totalorder %v260_v42, %v1223_v31  ;;  %v336_v56 = vmul.u32 8, %v334_v54  ;;  %p1069_p8 = pnand %p1068_p7, %p1062_p4 }
  0x58   :  { %891 = vmatprep.subr.bf16.mxu0 %v1099_v0  ;;  %vm892_vm15 = vmpackc.low %vm297_vm14, %vm296_vm13  ;;  %v941_v9 = vpack.c.bf16 %v517_v8, %v514_v7  ;;  %v944_v12 = vpack.c.bf16 %v523_v11, %v520_v10  ;;  %v926_v42 = vpack.c.bf16 %v528_v40, %v525_v39 }
  0x59   :  { %vm298_vm6 = vmand %vm272_vm2, %vm286_vm4  ;;  %vm277_vm2 = vcmp.ge.s32.totalorder %v262_v44, %v1217_v28  ;;  %vm291_vm4 = vcmp.lt.s32.totalorder %v262_v44, %v1223_v31  ;;  %v531_v44 = vld [vmem:[#allocation8 + $0xf8] sm:$0xff] }
  0x5a   :  { %887 = vmatpush3.bf16.msra.mxu1 %v886_v14  ;;  %vm299_vm7 = vmand %vm273_vm3, %vm287_vm5  ;;  %vm290_vm3 = vcmp.lt.s32.totalorder %v261_v43, %v1223_v31  ;;  %v529_v14 = vld [vmem:[#allocation8 + $0xe8] sm:$0xff] }
  0x5b   :  { %906 = vmatprep.subr.bf16.mxu1 %v1099_v0  ;;  %893 = vmatpush3.bf16.msk.msra.mxu0 %vm892_vm15, %v1102_v33  ;;  %vm895_vm8 = vmpackc.low %vm299_vm7, %vm298_vm6  ;;  %vm278_vm6 = vcmp.ge.s32.totalorder %v263_v45, %v1217_v28  ;;  %vm292_vm7 = vcmp.lt.s32.totalorder %v263_v45, %v1223_v31  ;;  %v534_v45 = vld [vmem:[#allocation8 + $0x110] sm:$0xff] }
  0x5c   :  { %894 = vmatprep.subr.bf16.mxu0 %v1099_v0  ;;  %vm300_vm13 = vmand %vm274_vm9, %vm288_vm11  ;;  %vm279_vm9 = vcmp.ge.s32.totalorder %v264_v46, %v1217_v28 }
  0x5d   :  { %vm301_vm14 = vmand %vm275_vm10, %vm289_vm12  ;;  %vm293_vm10 = vcmp.lt.s32.totalorder %v264_v46, %v1223_v31  ;;  %v512_v31 = vld [vmem:[#allocation8 + $0x60] sm:$0xff] }
  0x5e   :  { %vm898_vm15 = vmpackc.low %vm301_vm14, %vm300_vm13 }
  0x5f   :  { %896 = vmatpush3.bf16.msk.msra.mxu0 %vm895_vm8, %v1102_v33  ;;  %vm303_vm8 = vmand %vm277_vm2, %vm291_vm4  ;;  %vm333_vm2 = vcmp.ge.s32.totalorder %v1211_v26, %v331_v53  ;;  %vm425_vm4 = vcmask 1043456   ;;  %v535_v53 = vld [vmem:[#allocation8 + $0x118] sm:$0xff] }
  0x60   :  { %897 = vmatprep.subr.bf16.mxu0 %v1099_v0  ;;  %vm304_vm12 = vmand %vm278_vm6, %vm292_vm7  ;;  %v950_v54 = vpack.c.bf16 %v535_v53, %v532_v51 }
  0x61   :  { %vm305_vm13 = vmand %vm279_vm9, %vm293_vm10 }
  0x62   :  { %vm904_vm14 = vmpackc.low %vm305_vm13, %vm304_vm12 }
  0x63   :  { %899 = vmatpush3.bf16.msk.msra.mxu0 %vm898_vm15, %v1102_v33  ;;  %vm346_vm15 = vcmask 785408  }
  0x64   :  { %900 = vmatprep.subr.bf16.mxu0 %v1099_v0 }
 0x128   :  { %v155_v16 = vpop.f32.mrb[0].mxu1 }
 0x129   :  { %v156_v17 = vadd.f32 %v718_v15, %v155_v16  ;;  %v803_v18 = vpop.f32.mrb[1].mxu1  ;;  %v947_v15 = vpack.c.bf16 %v529_v14, %v526_v13 }
 0x12a   :  { %v500_v18 = vld [vmem:[#allocation8] sm:$0xff] }
 0x12b   :  { %v160_v19 = vmul.f32 0.70710677, %v156_v17  ;;  %v159_v21 = vmul.f32 0.5, %v156_v17 }
 0x12d   :  { %967 = verf.f32 %v160_v19  ;;  %v503_v19 = vld [vmem:[#allocation8 + $0x18] sm:$0xff] }
 0x137   :  { %v968_v20 = vpop.eup %967 }
 0x138   :  { %v162_v22 = vadd.f32 1.0, %v968_v20  ;;  %v507_v20 = vld [vmem:[#allocation8 + $0x38] sm:$0xff] }
 0x13a   :  { %v163_v23 = vmul.f32 %v162_v22, %v159_v21  ;;  %v510_v21 = vld [vmem:[#allocation8 + $0x50] sm:$0xff]  ;;  %v912_v22 = vpack.c.bf16 %v503_v19, %v500_v18 }
 0x13c   :  { %813 = vmatmul.mubr.msk.f32.vlgmr.msra.gmra.mrb[2].mxu1 %vm85_vm1, %v163_v23  ;;  %vm245_vm1 = vcmask 779264   ;;  %v914_v23 = vpack.c.bf16 %v510_v21, %v507_v20 }
 0x13d   :  { %846 = vmatprep.mubr.msk.f32.mxu1 %vm1100_vm0, %v1101_v1 }
 0x20f   :  { %v241_v35 = vpop.f32.mrb[2].mxu1 }
 0x210   :  { %v242_v36 = vadd.f32 %v720_v34, %v241_v35  ;;  %v814_v37 = vpop.f32.mrb[3].mxu1  ;;  %v522_v34 = vld [vmem:[#allocation8 + $0xb0] sm:$0xff]  ;;  %v920_v35 = vpack.c.bf16 %v515_v32, %v512_v31 }
 0x211   :  { %v518_v37 = vld [vmem:[#allocation8 + $0x90] sm:$0xff] }
 0x212   :  { %v246_v38 = vsel %vm245_vm1, %v242_v36, -inf  ;;  %vm276_vm1 = vcmp.ge.s32.totalorder %v261_v43, %v1217_v28  ;;  %v513_v28 = vld [vmem:[#allocation8 + $0x68] sm:$0xff]  ;;  %v524_v43 = vld [vmem:[#allocation8 + $0xc0] sm:$0xff] }
 0x213   :  { %247 = vmax.xlane.f32.xlu0 %v246_v38  ;;  %vm302_vm5 = vmand %vm276_vm1, %vm290_vm3  ;;  %vm332_vm1 = vcmp.ge.s32.totalorder %v1211_v26, %v330_v52  ;;  %vm339_vm3 = vcmp.lt.s32.totalorder %v1211_v26, %v337_v55  ;;  %v521_v38 = vld [vmem:[#allocation8 + $0xa8] sm:$0xff] }
 0x214   :  { %vm901_vm11 = vmpackc.low %vm303_vm8, %vm302_vm5  ;;  %vm338_vm5 = vcmp.lt.s32.totalorder %v1211_v26, %v336_v56  ;;  %vm421_vm8 = vcmask 97280   ;;  %v509_v26 = vld [vmem:[#allocation8 + $0x48] sm:$0xff]  ;;  %v924_v41 = vpack.c.bf16 %v521_v38, %v518_v37 }
 0x215   :  { %902 = vmatpush3.bf16.msk.msra.mxu0 %vm901_vm11, %v1102_v33  ;;  %vm340_vm6 = vmand %vm332_vm1, %vm338_vm5  ;;  %v916_v30 = vpack.c.bf16 %v509_v26, %v506_v24 }
 0x216   :  { %903 = vmatprep.subr.bf16.mxu0 %v1099_v0  ;;  %vm908_vm7 = vmpackc.low %vm425_vm4, %vm340_vm6 }
 0x219   :  { %905 = vmatpush3.bf16.msk.msra.mxu0 %vm904_vm14, %v1102_v33  ;;  %v519_v33 = vld [vmem:[#allocation8 + $0x98] sm:$0xff] }
 0x21a   :  { %934 = vmatprep.subr.bf16.mxu0 %v1099_v0 }
 0x2a0   :  { %v248_v47 = vpop.xlane.xlu0 %247 }
 0x2a1   :  { %v249_v48 = vsub.f32 %v242_v36, %v248_v47  ;;  %v922_v36 = vpack.c.bf16 %v522_v34, %v519_v33  ;;  %v930_v47 = vpack.c.bf16 %v534_v45, %v531_v44 }
 0x2a3   :  { %v250_v49 = vmul.f32 1.442695, %v249_v48  ;;  %v530_v48 = vld [vmem:[#allocation8 + $0xf0] sm:$0xff] }
 0x2a5   :  { %969 = vpow2.f32 %v250_v49  ;;  %v533_v49 = vld [vmem:[#allocation8 + $0x108] sm:$0xff] }
 0x2a6   :  { %v932_v52 = vpack.c.bf16 %v533_v49, %v530_v48 }
 0x2af   :  { %v1269_v50 = vpop.eup %969 }
 0x2b0   :  { %840 = vmatmul.mubr.msk.f32.vlgmr.msra.gmra.mrb[0].mxu0 %vm346_vm15, %v1269_v50 }
 0x2b1   :  { %873 = vmatprep.mubr.msk.f32.mxu0 %vm1100_vm0, %v1101_v1  ;;  %vm341_vm0 = vmand %vm333_vm2, %vm339_vm3  ;;  %936 = vmatpush3.bf16.msra.mxu0 %v935_v3 }
 0x2b2   :  { %v735_v57 = vsel %vm341_vm0, 1.0, %v1101_v1  ;;  %937 = vmatprep.subr.bf16.mxu0 %v1099_v0 }
 0x2b3   :  { %v907_v59 = vpack.c.bf16 %v735_v57, %v1103_v58  ;;  %v1104_v58 = vmov 1983009808  }
 0x2b5   :  { %909 = vmatpush3.bf16.msk.msra.mxu1 %vm908_vm7, %v907_v59  ;;  %939 = vmatpush3.bf16.msra.mxu0 %v938_v6  ;;  %v685_v59 = vunpack.c.l.s4 %v1104_v58 }
 0x2b6   :  { %911 = vmatprep.subr.bf16.mxu1 %v910_v62  ;;  %940 = vmatprep.subr.bf16.mxu0 %v1099_v0 }
 0x2b7   :  { %v686_v60 = vunpack.c.0.s8 %v685_v59 }
 0x2b9   :  { %942 = vmatpush3.bf16.msra.mxu0 %v941_v9  ;;  %v689_v63 = vsub.s32 %v686_v60, %v1209_v25 }
 0x2ba   :  { %943 = vmatprep.subr.bf16.mxu0 %v1099_v0 }
 0x2bd   :  { %945 = vmatpush3.bf16.msra.mxu0 %v944_v12 }
 0x2be   :  { %946 = vmatprep.subr.bf16.mxu0 %v1099_v0 }
 0x2c1   :  { %948 = vmatpush3.bf16.msra.mxu0 %v947_v15 }
 0x2c2   :  { %949 = vmatprep.subr.bf16.mxu0 %v1099_v0  ;;  %v918_v0 = vpack.c.bf16 %v516_v29, %v513_v28 }
 0x2c5   :  { %951 = vmatpush3.bf16.msra.mxu0 %v950_v54 }
 0x383   :  { %v416_v16 = vpop.f32.mrb[0].mxu0 }
 0x384   :  { %971 = vrcp.f32 %v416_v16  ;;  %v841_v17 = vpop.f32.mrb[1].mxu0 }
 0x38e   :  { %v972_v27 = vpop.eup %971 }
 0x38f   :  { %847 = vmatmul.mubr.msk.f32.vlgmr.msra.gmra.mrb[4].mxu1 %vm421_vm8, %v972_v27 }
 0x390   :  { %913 = vmatpush1.bf16.msra.mxu1 %v912_v22  ;;  %603 = vmatprep.mubr.f32.mxu1 %v1101_v1  ;;  %v527_v1 = vld [vmem:[#allocation8 + $0xd8] sm:$0xff] }
 0x391   :  { %915 = vmatprep.subr.bf16.mxu1 %v914_v23  ;;  %v928_v46 = vpack.c.bf16 %v527_v1, %v524_v43 }
 0x394   :  { %917 = vmatpush1.bf16.msra.mxu1 %v916_v30 }
 0x395   :  { %919 = vmatprep.subr.bf16.mxu1 %v918_v0 }
 0x398   :  { %921 = vmatpush1.bf16.msra.mxu1 %v920_v35 }
 0x399   :  { %923 = vmatprep.subr.bf16.mxu1 %v922_v36 }
 0x39c   :  { %925 = vmatpush1.bf16.msra.mxu1 %v924_v41 }
 0x39d   :  { %927 = vmatprep.subr.bf16.mxu1 %v926_v42 }
 0x3a0   :  { %929 = vmatpush1.bf16.msra.mxu1 %v928_v46 }
 0x3a1   :  { %931 = vmatprep.subr.bf16.mxu1 %v930_v47 }
 0x3a4   :  { %933 = vmatpush1.bf16.msra.mxu1 %v932_v52 }
 0x462   :  { %v495_v55 = vpop.f32.mrb[4].mxu1 }
 0x463   :  { %v499_v56 = vmul.f32 %v1269_v50, %v495_v55  ;;  %v848_v57 = vpop.f32.mrb[5].mxu1 }
 0x465   :  { %752 = vmatmul.mubr.msk.f32.vlgmr.msra.gmra.mrb[6].mxu1 %vm346_vm15, %v499_v56  ;;  %874 = vmatmul.mubr.msk.f32.vlgmr.msra.gmra.mrb[2].mxu0 %vm346_vm15, %v499_v56 }
 0x538   :  { %v605_v61 = vpop.f32.mrb[6].mxu1  ;;  %v676_v62 = vpop.f32.mrb[2].mxu0 }
 0x539   :  { %v607_v2 = vpop.f32.mrb[7].mxu1  ;;  %v875_v3 = vpop.f32.mrb[3].mxu0  ;;  %v697_v5 = vrot.slane %v676_v62, %v689_v63 }
 0x53a   :  { %v683_v4 = vcombine.low %v605_v61, %v607_v2 }
 0x53c   :  { %v690_v6 = vrot.slane %v683_v4, %v689_v63 }
 0x53e   :  { %v698_v50 = vcombine.low %v690_v6, %v697_v5 }
 0x540   :  { %700 = vst [vmem:[#allocation10] sm:$0x3f] %v698_v50 }
 0x541   :  { %1072 = shalt.err (!%p1069_p8)
}
 0x542   :  { %s1073_s23 = scalar_lea.hbm %s1311_s5, 96 }
 0x543   :  { %p1074_p9 = scmp.ne.s32.totalorder %s1311_s5, %s1073_s23  ;;  %p1077_p10 = scmp.lt.u32.totalorder %s1073_s23, %s1311_s5 }
 0x545   :  { %p1079_p11 = pnand %p1077_p10, %p1074_p9 }
 0x547   :  { %1082 = shalt.err (!%p1079_p11)
}
 0x548   :  { %710 = dma.vmem_to_hbm [thread:$0]  %s708_s19, 96, %s1311_s5, [#allocation4]  }
 0x549   :  { %1089 = dma.done.wait [#allocation4], 96  }
 0x54a   :  { %1090 = vsyncadd [#allocation4], 4294967200 }
 0x54b   :  { %714 = vsyncpa [#allocation3], 1 }
 0x54c   :  { %715 = vsyncpa [#allocation6], 1 }
 0x54d   :  { %716 = vsyncpa [#allocation9], 1 }
 0x54e   :  { %717 = vsyncpa [#allocation4], 1 }

</bundles_post_ra>
